<compile_context>
chip_gen: v5e
topology: v5e:2x2
jax: 0.10.0
libtpu: 0.0.40
codegen_flags: <defaults>
</compile_context>

<pallas_src>
import functools

import jax
import jax.numpy as jnp
from jax import lax
from jax.experimental import pallas as pl
from jax.experimental.pallas import tpu as pltpu

# ----------------------------- configuration --------------------------------
INV_INT16 = 1.0 / 32768.0
CF = 0.3                      # compress_factor
CF_SQRT = CF * 0.5            # compress_factor_sqrt
CF_INV = 1.0 / CF             # compress_factor_inv
MAG_EPS = 1e-12

N_FFT = 128
HOP = 64
N_FREQ = N_FFT // 2 + 1       # 65 real one-sided bins
F_PAD = 128                   # frequency axis padded to full lane width
ENH_HIDDEN = 128              # stand-in enhancer hidden width (lane dense)


def _round_up(x, m):
    return (x + m - 1) // m * m


# ------------------------------ Pallas kernels -------------------------------
def _norm_kernel(inv_len, x_ref, scale_ref, nf_ref, ssq_ref):
    # norm_factor = sqrt(mean((audio*inv_int16)^2) + 1e-6); padding rows are zero.
    step = pl.program_id(0)

    @pl.when(step == 0)
    def _():
        ssq_ref[...] = jnp.zeros_like(ssq_ref)

    a = x_ref[...]
    ssq_ref[...] += jnp.sum(jnp.sum(a * a, axis=1, keepdims=True),
                            axis=0, keepdims=True)

    @pl.when(step == pl.num_programs(0) - 1)
    def _():
        ms = ssq_ref[...] * (INV_INT16 * INV_INT16 * inv_len) + 1e-6
        nf_ref[...] = jnp.sqrt(ms)
        scale_ref[...] = INV_INT16 * lax.rsqrt(ms)     # applied to raw int16 values


def _enhance_kernel(T, TB, sc_ref, frames_ref, fwd_ref, inv_ref,
                    w1_ref, b1_ref, w2_ref, b2_ref, pconst_ref, out_ref):
    scale = sc_ref[0]                                   # inv_int16 / norm_factor
    nf = sc_ref[1]                                      # norm_factor

    # STFT: single K=128 MXU matmul against the Hann-windowed [cos | -sin] basis.
    x = (frames_ref[...] * scale).astype(jnp.bfloat16)                  # (TB, 128)
    reim = jnp.dot(x, fwd_ref[...], preferred_element_type=jnp.float32)  # (TB, 256)
    re = reim[:, :F_PAD]
    im = reim[:, F_PAD:]

    # Magnitude compression; log(mag2) is shared with the decompression below so
    # the explicit rsqrt (unit-phase) is never computed (4 EUP ops/elem + tanh).
    mag2 = re * re + im * im + MAG_EPS
    lm = jnp.log(mag2)
    mag = jnp.exp(CF_SQRT * lm)                          # (re^2+im^2)^0.15

    # TODO(synk): the real ZipEnhancer network is not in the provided source;
    # deterministic residual MLP stand-in over the (padded) frequency axis.
    h = jnp.tanh(jnp.dot(mag.astype(jnp.bfloat16), w1_ref[...],
                         preferred_element_type=jnp.float32) + b1_ref[...])
    menh = jnp.maximum(
        mag + jnp.dot(h.astype(jnp.bfloat16), w2_ref[...],
                      preferred_element_type=jnp.float32) + b2_ref[...], 0.0)

    # Decompress and divide by |z| in one exp:
    #   menh^(1/0.3) * re/|z| == exp(CF_INV*log(menh+eps) - 0.5*log(mag2)) * re
    t = jnp.exp(CF_INV * jnp.log(menh + MAG_EPS) - 0.5 * lm)
    rs = (t * re).astype(jnp.bfloat16)
    ims = (t * im).astype(jnp.bfloat16)

    # ISTFT: single K=256 MXU matmul against the stacked windowed inverse basis.
    syn = jnp.dot(jnp.concatenate([rs, ims], axis=1), inv_ref[...],
                  preferred_element_type=jnp.float32)                   # (TB, 128)

    # Per-frame 32767/sum(win^2) OLA normalization and de-norm factor, rebuilt in
    # registers (no pscale HBM stream). Frames >= T never contribute; frame 0's
    # left half is dropped by the crop so it is zeroed too.
    fid = pl.program_id(0) * TB + lax.broadcasted_iota(jnp.int32, (TB, N_FFT), 0)
    col = lax.broadcasted_iota(jnp.int32, (TB, N_FFT), 1)
    first = col < HOP
    a_row = pconst_ref[0:1, :] * nf      # interior: 32767/(win2[:64]+win2[64:])
    e_row = pconst_ref[1:2, :] * nf      # last frame right half: 32767/win2[64:]
    normal = (first & (fid >= 1) & (fid <= T - 1)) | ((~first) & (fid <= T - 2))
    endsec = (~first) & (fid == T - 1)
    ps = jnp.where(normal, a_row, 0.0) + jnp.where(endsec, e_row, 0.0)
    out_ref[...] = syn * ps


# ------------------------------ parameter setup -------------------------------
def make_params():
    n = jnp.arange(N_FFT, dtype=jnp.float32)
    k = jnp.arange(N_FREQ, dtype=jnp.float32)

    # periodic Hann window (torch.hann_window default)
    win = 0.5 * (1.0 - jnp.cos(2.0 * jnp.pi * n / N_FFT))                  # (128,)
    win2 = win * win

    # forward one-sided real DFT basis, freq padded 65 -> 128 lanes, window folded
    # in, [cos | -sin] concatenated so the STFT is ONE K=128 matmul.
    ang = 2.0 * jnp.pi * n[:, None] * k[None, :] / N_FFT                   # (128, 65)
    cosb = jnp.pad(jnp.cos(ang), ((0, 0), (0, F_PAD - N_FREQ)))
    sinb = jnp.pad(-jnp.sin(ang), ((0, 0), (0, F_PAD - N_FREQ)))
    fwd = (win[:, None] * jnp.concatenate([cosb, sinb], axis=1)).astype(jnp.bfloat16)

    # inverse one-sided DFT basis (weight 2 for interior bins), padded rows zero,
    # synthesis window folded in, [icos ; isin] stacked so ISTFT is ONE K=256 matmul.
    wk = jnp.where((k == 0) | (k == N_FFT // 2), 1.0, 2.0)
    ang2 = 2.0 * jnp.pi * k[:, None] * n[None, :] / N_FFT                  # (65, 128)
    icos = jnp.pad(wk[:, None] * jnp.cos(ang2) / N_FFT, ((0, F_PAD - N_FREQ), (0, 0)))
    isin = jnp.pad(-wk[:, None] * jnp.sin(ang2) / N_FFT, ((0, F_PAD - N_FREQ), (0, 0)))
    inv = (jnp.concatenate([icos, isin], axis=0) * win[None, :]).astype(jnp.bfloat16)

    # OLA normalization constants used to rebuild pscale inside the kernel.
    wsum = win2[:HOP] + win2[HOP:]                       # >= 0.5 everywhere
    a_row = 32767.0 / jnp.concatenate([wsum, wsum])
    e_row = jnp.concatenate([jnp.zeros((HOP,), jnp.float32), 32767.0 / win2[HOP:]])
    pconst = jnp.stack([a_row, e_row], axis=0)           # (2, 128)

    # deterministic stand-in enhancer weights; padded frequency rows of w1 are zero
    # so the padded bins never influence the real ones.
    kw1, kw2 = jax.random.split(jax.random.PRNGKey(42))
    w1 = 0.02 * jax.random.normal(kw1, (F_PAD, ENH_HIDDEN), jnp.float32)
    w1 = w1.at[N_FREQ:, :].set(0.0)
    w2 = 0.02 * jax.random.normal(kw2, (ENH_HIDDEN, F_PAD), jnp.float32)
    b1 = jnp.zeros((1, ENH_HIDDEN), jnp.float32)
    b2 = jnp.zeros((1, F_PAD), jnp.float32)

    return dict(fwd=fwd, inv=inv, pconst=pconst,
                w1=w1.astype(jnp.bfloat16), b1=b1,
                w2=w2.astype(jnp.bfloat16), b2=b2)


# ------------------------------ full forward ----------------------------------
def zip_enhancer_forward(audio_i16, params):
    """audio_i16: int16 (1, 1, L).  Returns int16 (1, 1, L)."""
    b, c, L = audio_i16.shape
    assert b == 1 and c == 1

    x = audio_i16.reshape(-1).astype(jnp.float32)        # raw int16 values as f32

    # ---- call A: tiled lane-dense sum-of-squares -> norm scalars ----
    R = pl.cdiv(L, 128)
    RB = min(1024, _round_up(R, 8))
    R_pad = _round_up(R, RB)
    nrows = jnp.pad(x, (0, R_pad * 128 - L)).reshape(R_pad, 128)
    scale, nf = pl.pallas_call(
        functools.partial(_norm_kernel, 1.0 / float(L)),
        grid=(R_pad // RB,),
        in_specs=[pl.BlockSpec((RB, 128), lambda i: (i, 0))],
        out_specs=(pl.BlockSpec((1, 1), lambda i: (0, 0)),
                   pl.BlockSpec((1, 1), lambda i: (0, 0))),
        out_shape=(jax.ShapeDtypeStruct((1, 1), jnp.float32),
                   jax.ShapeDtypeStruct((1, 1), jnp.float32)),
        scratch_shapes=[pltpu.VMEM((1, 1), jnp.float32)],
        compiler_params=pltpu.CompilerParams(dimension_semantics=("arbitrary",)),
    )(nrows)
    scalars = jnp.concatenate([scale.reshape(1), nf.reshape(1)], axis=0)   # (2,)

    # ---- frame layout: ONE pre-framed lane-dense (T_pad, 128) slab ----
    T = 1 + L // HOP                        # torch.stft frame count (center padding)
    # >=2 grid steps when possible (v7x dual TensorCore), 16-aligned tiles, cap 512.
    TB = max(16, min(512, _round_up(pl.cdiv(T, 2), 16)))
    T_pad = _round_up(T, TB)

    L64 = _round_up(L, HOP)
    h_sig = L64 // HOP
    rows = jnp.pad(x, (0, L64 - L)).reshape(h_sig, HOP)
    rows = jnp.pad(rows, ((1, T_pad - h_sig), (0, 0)))           # (T_pad + 1, 64)
    frames = jnp.concatenate([rows[:T_pad], rows[1:]], axis=1)   # (T_pad, 128)

    # ---- call B: fused STFT -> enhancer -> ISTFT over frame tiles ----
    frames_out = pl.pallas_call(
        functools.partial(_enhance_kernel, T, TB),
        grid=(T_pad // TB,),
        in_specs=[
            pl.BlockSpec(memory_space=pltpu.MemorySpace.SMEM),        # [scale, nf]
            pl.BlockSpec((TB, N_FFT), lambda i: (i, 0)),              # frames
            pl.BlockSpec((N_FFT, 2 * F_PAD), lambda i: (0, 0)),       # fwd basis
            pl.BlockSpec((2 * F_PAD, N_FFT), lambda i: (0, 0)),       # inv basis
            pl.BlockSpec((F_PAD, ENH_HIDDEN), lambda i: (0, 0)),      # w1
            pl.BlockSpec((1, ENH_HIDDEN), lambda i: (0, 0)),          # b1
            pl.BlockSpec((ENH_HIDDEN, F_PAD), lambda i: (0, 0)),      # w2
            pl.BlockSpec((1, F_PAD), lambda i: (0, 0)),               # b2
            pl.BlockSpec((2, N_FFT), lambda i: (0, 0)),               # pconst
        ],
        out_specs=pl.BlockSpec((TB, N_FFT), lambda i: (i, 0)),
        out_shape=jax.ShapeDtypeStruct((T_pad, N_FFT), jnp.float32),
        compiler_params=pltpu.CompilerParams(
            dimension_semantics=("parallel",),
            vmem_limit_bytes=32 * 1024 * 1024),
    )(scalars, frames, params["fwd"], params["inv"], params["w1"], params["b1"],
      params["w2"], params["b2"], params["pconst"])

    # vectorized 50%-overlap add (single shift-add), crop, clamp, int16 cast — glue.
    left = frames_out[:, :HOP]
    right = frames_out[:, HOP:]
    z = jnp.zeros((1, HOP), jnp.float32)
    ola = jnp.concatenate([left, z], axis=0) + jnp.concatenate([z, right], axis=0)
    y = ola.reshape(-1)[HOP:HOP + L]                    # drop the center padding
    y = jnp.clip(y, -32767.0, 32767.0)                  # == clamp(-1,1)*32767 (folded)
    return y.astype(jnp.int16).reshape(1, 1, L)


# ----------------------------------- main --------------------------------------
if __name__ == "__main__":
    key = jax.random.PRNGKey(0)
    L = 2048
    audio_i16 = jax.random.randint(
        key, (1, 1, L), -32768, 32768, dtype=jnp.int32).astype(jnp.int16)

    params = make_params()
    fwd = jax.jit(zip_enhancer_forward)
    out = fwd(audio_i16, params)
    jax.block_until_ready(out)

    assert out.shape == (1, 1, L) and out.dtype == jnp.int16
    print("KERNEL_OK")
</pallas_src>

<mosaic_0001>
module attributes {stable_mosaic.version = 11 : i64} {
  func.func @_norm_kernel(%arg0: i32, %arg1: memref<16x128xf32, #tpu.memory_space<vmem>>, %arg2: memref<1x1xf32, #tpu.memory_space<vmem>>, %arg3: memref<1x1xf32, #tpu.memory_space<vmem>>, %arg4: memref<1x1xf32, #tpu.memory_space<vmem>>) attributes {dimension_semantics = [#tpu.dimension_semantics<arbitrary>], iteration_bounds = array<i64: 1>, scalar_prefetch = 0 : i64, scratch_operands = 1 : i64, tpu.core_type = #tpu.core_type<tc>, window_params = [{transform_indices = @transform_0, window_bounds = array<i64: 16, 128>}, {pipeline_mode = #tpu.pipeline_mode<synchronous>, transform_indices = @transform_1, window_bounds = array<i64: 1, 1>}, {pipeline_mode = #tpu.pipeline_mode<synchronous>, transform_indices = @transform_2, window_bounds = array<i64: 1, 1>}]} {
    %c0_i32 = arith.constant 0 : i32
    %0 = arith.cmpi eq, %arg0, %c0_i32 : i32
    %1 = arith.extui %0 : i1 to i32
    %c0_i32_0 = arith.constant 0 : i32
    %2 = arith.cmpi ne, %1, %c0_i32_0 : i32
    scf.if %2 {
      %cst_9 = arith.constant 0.000000e+00 : f32
      %15 = vector.broadcast %cst_9 : f32 to vector<1x1xf32>
      %c0_10 = arith.constant 0 : index
      %c0_11 = arith.constant 0 : index
      %16 = vector.load %arg4[%c0_10, %c0_11] : memref<1x1xf32, #tpu.memory_space<vmem>>, vector<1x1xf32>
      tpu.vector_store %arg4[%c0_10, %c0_11], %15 {strides = array<i32>} : memref<1x1xf32, #tpu.memory_space<vmem>>, vector<1x1xf32>,
    } else {
    }
    %c0 = arith.constant 0 : index
    %c0_1 = arith.constant 0 : index
    %3 = vector.load %arg1[%c0, %c0_1] : memref<16x128xf32, #tpu.memory_space<vmem>>, vector<16x128xf32>
    %c0_2 = arith.constant 0 : index
    %c0_3 = arith.constant 0 : index
    %4 = vector.load %arg4[%c0_2, %c0_3] : memref<1x1xf32, #tpu.memory_space<vmem>>, vector<1x1xf32>
    %5 = arith.mulf %3, %3 : vector<16x128xf32>
    %cst = arith.constant dense<0.000000e+00> : vector<16xf32>
    %6 = vector.multi_reduction <add>, %5, %cst [1] : vector<16x128xf32> to vector<16xf32>
    %7 = vector.shape_cast %6 : vector<16xf32> to vector<16x1xf32>
    %cst_4 = arith.constant dense<0.000000e+00> : vector<1xf32>
    %8 = vector.multi_reduction <add>, %7, %cst_4 [0] : vector<16x1xf32> to vector<1xf32>
    %9 = vector.shape_cast %8 : vector<1xf32> to vector<1x1xf32>
    %10 = arith.addf %4, %9 : vector<1x1xf32>
    %c0_5 = arith.constant 0 : index
    %c0_6 = arith.constant 0 : index
    %11 = vector.load %arg4[%c0_5, %c0_6] : memref<1x1xf32, #tpu.memory_space<vmem>>, vector<1x1xf32>
    tpu.vector_store %arg4[%c0_5, %c0_6], %10 {strides = array<i32>} : memref<1x1xf32, #tpu.memory_space<vmem>>, vector<1x1xf32>,
    %c0_i32_7 = arith.constant 0 : i32
    %12 = arith.cmpi eq, %arg0, %c0_i32_7 : i32
    %13 = arith.extui %12 : i1 to i32
    %c0_i32_8 = arith.constant 0 : i32
    %14 = arith.cmpi ne, %13, %c0_i32_8 : i32
    scf.if %14 {
      %c0_9 = arith.constant 0 : index
      %c0_10 = arith.constant 0 : index
      %15 = vector.load %arg4[%c0_9, %c0_10] : memref<1x1xf32, #tpu.memory_space<vmem>>, vector<1x1xf32>
      %cst_11 = arith.constant 4.54747351E-13 : f32
      %16 = vector.broadcast %cst_11 : f32 to vector<1x1xf32>
      %17 = arith.mulf %15, %16 : vector<1x1xf32>
      %cst_12 = arith.constant 9.99999997E-7 : f32
      %18 = vector.broadcast %cst_12 : f32 to vector<1x1xf32>
      %19 = arith.addf %17, %18 : vector<1x1xf32>
      %20 = math.sqrt %19 : vector<1x1xf32>
      %c0_13 = arith.constant 0 : index
      %c0_14 = arith.constant 0 : index
      %21 = vector.load %arg3[%c0_13, %c0_14] : memref<1x1xf32, #tpu.memory_space<vmem>>, vector<1x1xf32>
      tpu.vector_store %arg3[%c0_13, %c0_14], %20 {strides = array<i32>} : memref<1x1xf32, #tpu.memory_space<vmem>>, vector<1x1xf32>,
      %22 = math.rsqrt %19 : vector<1x1xf32>
      %cst_15 = arith.constant 3.05175781E-5 : f32
      %23 = vector.broadcast %cst_15 : f32 to vector<1x1xf32>
      %24 = arith.mulf %23, %22 : vector<1x1xf32>
      %c0_16 = arith.constant 0 : index
      %c0_17 = arith.constant 0 : index
      %25 = vector.load %arg2[%c0_16, %c0_17] : memref<1x1xf32, #tpu.memory_space<vmem>>, vector<1x1xf32>
      tpu.vector_store %arg2[%c0_16, %c0_17], %24 {strides = array<i32>} : memref<1x1xf32, #tpu.memory_space<vmem>>, vector<1x1xf32>,
    } else {
    }
    return
  }
  func.func @transform_0(%arg0: i32) -> (i32, i32) {
    %c0_i32 = arith.constant 0 : i32
    %c0_i32_0 = arith.constant 0 : i32
    return %arg0, %c0_i32 : i32, i32
  }
  func.func @transform_1(%arg0: i32) -> (i32, i32) {
    %c0_i32 = arith.constant 0 : i32
    %c0_i32_0 = arith.constant 0 : i32
    %c0_i32_1 = arith.constant 0 : i32
    return %c0_i32, %c0_i32_0 : i32, i32
  }
  func.func @transform_2(%arg0: i32) -> (i32, i32) {
    %c0_i32 = arith.constant 0 : i32
    %c0_i32_0 = arith.constant 0 : i32
    %c0_i32_1 = arith.constant 0 : i32
    return %c0_i32, %c0_i32_0 : i32, i32
  }
}

module attributes {stable_mosaic.version = 11 : i64} {
  func.func @_enhance_kernel(%arg0: i32, %arg1: memref<2xf32, #tpu.memory_space<smem>>, %arg2: memref<32x128xf32, #tpu.memory_space<vmem>>, %arg3: memref<128x256xbf16, #tpu.memory_space<vmem>>, %arg4: memref<256x128xbf16, #tpu.memory_space<vmem>>, %arg5: memref<128x128xbf16, #tpu.memory_space<vmem>>, %arg6: memref<1x128xf32, #tpu.memory_space<vmem>>, %arg7: memref<128x128xbf16, #tpu.memory_space<vmem>>, %arg8: memref<1x128xf32, #tpu.memory_space<vmem>>, %arg9: memref<2x128xf32, #tpu.memory_space<vmem>>, %arg10: memref<32x128xf32, #tpu.memory_space<vmem>>) attributes {dimension_semantics = [#tpu.dimension_semantics<parallel>], iteration_bounds = array<i64: 2>, scalar_prefetch = 0 : i64, scratch_operands = 0 : i64, tpu.core_type = #tpu.core_type<tc>, window_params = [{transform_indices = @transform_0, window_bounds = array<i64: 2>}, {transform_indices = @transform_1, window_bounds = array<i64: 32, 128>}, {pipeline_mode = #tpu.pipeline_mode<synchronous>, transform_indices = @transform_2, window_bounds = array<i64: 128, 256>}, {pipeline_mode = #tpu.pipeline_mode<synchronous>, transform_indices = @transform_3, window_bounds = array<i64: 256, 128>}, {pipeline_mode = #tpu.pipeline_mode<synchronous>, transform_indices = @transform_4, window_bounds = array<i64: 128, 128>}, {pipeline_mode = #tpu.pipeline_mode<synchronous>, transform_indices = @transform_5, window_bounds = array<i64: 1, 128>}, {pipeline_mode = #tpu.pipeline_mode<synchronous>, transform_indices = @transform_6, window_bounds = array<i64: 128, 128>}, {pipeline_mode = #tpu.pipeline_mode<synchronous>, transform_indices = @transform_7, window_bounds = array<i64: 1, 128>}, {pipeline_mode = #tpu.pipeline_mode<synchronous>, transform_indices = @transform_8, window_bounds = array<i64: 2, 128>}, {transform_indices = @transform_9, window_bounds = array<i64: 32, 128>}]} {
    %c0 = arith.constant 0 : index
    %0 = memref.load %arg1[%c0] : memref<2xf32, #tpu.memory_space<smem>>
    %c1 = arith.constant 1 : index
    %1 = memref.load %arg1[%c1] : memref<2xf32, #tpu.memory_space<smem>>
    %c0_0 = arith.constant 0 : index
    %c0_1 = arith.constant 0 : index
    %2 = vector.load %arg2[%c0_0, %c0_1] : memref<32x128xf32, #tpu.memory_space<vmem>>, vector<32x128xf32>
    %3 = vector.broadcast %0 : f32 to vector<32x128xf32>
    %4 = arith.mulf %2, %3 : vector<32x128xf32>
    %5 = arith.truncf %4 : vector<32x128xf32> to vector<32x128xbf16>
    %c0_2 = arith.constant 0 : index
    %c0_3 = arith.constant 0 : index
    %6 = vector.load %arg3[%c0_2, %c0_3] : memref<128x256xbf16, #tpu.memory_space<vmem>>, vector<128x256xbf16>
    %cst = arith.constant dense<0.000000e+00> : vector<32x256xf32>
    %7 = tpu.matmul %5, %6, %cst {dimension_numbers = #tpu.dot_dimension_numbers<[1], [0], [0], [1], [0, 0, 1, 1], [], []>} : vector<32x128xbf16>, vector<128x256xbf16>, vector<32x256xf32> -> vector<32x256xf32>
    %8 = vector.extract_strided_slice %7 {offsets = [0, 0], sizes = [32, 128], strides = [1, 1]} : vector<32x256xf32> to vector<32x128xf32>
    %9 = vector.extract_strided_slice %7 {offsets = [0, 128], sizes = [32, 128], strides = [1, 1]} : vector<32x256xf32> to vector<32x128xf32>
    %10 = arith.mulf %8, %8 : vector<32x128xf32>
    %11 = arith.mulf %9, %9 : vector<32x128xf32>
    %12 = arith.addf %10, %11 : vector<32x128xf32>
    %cst_4 = arith.constant 9.99999996E-13 : f32
    %13 = vector.broadcast %cst_4 : f32 to vector<32x128xf32>
    %14 = arith.addf %12, %13 : vector<32x128xf32>
    %15 = math.log %14 : vector<32x128xf32>
    %cst_5 = arith.constant 1.500000e-01 : f32
    %16 = vector.broadcast %cst_5 : f32 to vector<32x128xf32>
    %17 = arith.mulf %16, %15 : vector<32x128xf32>
    %18 = math.exp %17 : vector<32x128xf32>
    %19 = arith.truncf %18 : vector<32x128xf32> to vector<32x128xbf16>
    %c0_6 = arith.constant 0 : index
    %c0_7 = arith.constant 0 : index
    %20 = vector.load %arg5[%c0_6, %c0_7] : memref<128x128xbf16, #tpu.memory_space<vmem>>, vector<128x128xbf16>
    %cst_8 = arith.constant dense<0.000000e+00> : vector<32x128xf32>
    %21 = tpu.matmul %19, %20, %cst_8 {dimension_numbers = #tpu.dot_dimension_numbers<[1], [0], [0], [1], [0, 0, 1, 1], [], []>} : vector<32x128xbf16>, vector<128x128xbf16>, vector<32x128xf32> -> vector<32x128xf32>
    %c0_9 = arith.constant 0 : index
    %c0_10 = arith.constant 0 : index
    %22 = vector.load %arg6[%c0_9, %c0_10] : memref<1x128xf32, #tpu.memory_space<vmem>>, vector<1x128xf32>
    %23 = vector.broadcast %22 : vector<1x128xf32> to vector<32x128xf32>
    %24 = arith.addf %21, %23 : vector<32x128xf32>
    %25 = math.tanh %24 : vector<32x128xf32>
    %26 = arith.truncf %25 : vector<32x128xf32> to vector<32x128xbf16>
    %c0_11 = arith.constant 0 : index
    %c0_12 = arith.constant 0 : index
    %27 = vector.load %arg7[%c0_11, %c0_12] : memref<128x128xbf16, #tpu.memory_space<vmem>>, vector<128x128xbf16>
    %cst_13 = arith.constant dense<0.000000e+00> : vector<32x128xf32>
    %28 = tpu.matmul %26, %27, %cst_13 {dimension_numbers = #tpu.dot_dimension_numbers<[1], [0], [0], [1], [0, 0, 1, 1], [], []>} : vector<32x128xbf16>, vector<128x128xbf16>, vector<32x128xf32> -> vector<32x128xf32>
    %29 = arith.addf %18, %28 : vector<32x128xf32>
    %c0_14 = arith.constant 0 : index
    %c0_15 = arith.constant 0 : index
    %30 = vector.load %arg8[%c0_14, %c0_15] : memref<1x128xf32, #tpu.memory_space<vmem>>, vector<1x128xf32>
    %31 = vector.broadcast %30 : vector<1x128xf32> to vector<32x128xf32>
    %32 = arith.addf %29, %31 : vector<32x128xf32>
    %cst_16 = arith.constant 0.000000e+00 : f32
    %33 = vector.broadcast %cst_16 : f32 to vector<32x128xf32>
    %34 = arith.maximumf %32, %33 : vector<32x128xf32>
    %cst_17 = arith.constant 9.99999996E-13 : f32
    %35 = vector.broadcast %cst_17 : f32 to vector<32x128xf32>
    %36 = arith.addf %34, %35 : vector<32x128xf32>
    %37 = math.log %36 : vector<32x128xf32>
    %cst_18 = arith.constant 3.33333325 : f32
    %38 = vector.broadcast %cst_18 : f32 to vector<32x128xf32>
    %39 = arith.mulf %38, %37 : vector<32x128xf32>
    %cst_19 = arith.constant 5.000000e-01 : f32
    %40 = vector.broadcast %cst_19 : f32 to vector<32x128xf32>
    %41 = arith.mulf %40, %15 : vector<32x128xf32>
    %42 = arith.subf %39, %41 : vector<32x128xf32>
    %43 = math.exp %42 : vector<32x128xf32>
    %44 = arith.mulf %43, %8 : vector<32x128xf32>
    %45 = arith.truncf %44 : vector<32x128xf32> to vector<32x128xbf16>
    %46 = arith.mulf %43, %9 : vector<32x128xf32>
    %47 = arith.truncf %46 : vector<32x128xf32> to vector<32x128xbf16>
    %48 = tpu.concatenate %45, %47 in 1 : vector<32x128xbf16>, vector<32x128xbf16> -> vector<32x256xbf16>
    %c0_20 = arith.constant 0 : index
    %c0_21 = arith.constant 0 : index
    %49 = vector.load %arg4[%c0_20, %c0_21] : memref<256x128xbf16, #tpu.memory_space<vmem>>, vector<256x128xbf16>
    %cst_22 = arith.constant dense<0.000000e+00> : vector<32x128xf32>
    %50 = tpu.matmul %48, %49, %cst_22 {dimension_numbers = #tpu.dot_dimension_numbers<[1], [0], [0], [1], [0, 0, 1, 1], [], []>} : vector<32x256xbf16>, vector<256x128xbf16>, vector<32x128xf32> -> vector<32x128xf32>
    %c32_i32 = arith.constant 32 : i32
    %51 = arith.muli %arg0, %c32_i32 : i32
    %52 = tpu.iota {dimensions = array<i32: 0>} : vector<32x128xi32>
    %53 = vector.broadcast %51 : i32 to vector<32x128xi32>
    %54 = arith.addi %53, %52 : vector<32x128xi32>
    %55 = tpu.iota {dimensions = array<i32: 1>} : vector<32x128xi32>
    %c64_i32 = arith.constant 64 : i32
    %56 = vector.broadcast %c64_i32 : i32 to vector<32x128xi32>
    %57 = arith.cmpi slt, %55, %56 : vector<32x128xi32>
    %c0_23 = arith.constant 0 : index
    %c0_24 = arith.constant 0 : index
    %58 = vector.load %arg9[%c0_23, %c0_24] : memref<2x128xf32, #tpu.memory_space<vmem>>, vector<1x128xf32>
    %59 = vector.broadcast %1 : f32 to vector<1x128xf32>
    %60 = arith.mulf %58, %59 : vector<1x128xf32>
    %c1_25 = arith.constant 1 : index
    %c0_26 = arith.constant 0 : index
    %61 = vector.load %arg9[%c1_25, %c0_26] : memref<2x128xf32, #tpu.memory_space<vmem>>, vector<1x128xf32>
    %62 = vector.broadcast %1 : f32 to vector<1x128xf32>
    %63 = arith.mulf %61, %62 : vector<1x128xf32>
    %c1_i32 = arith.constant 1 : i32
    %64 = vector.broadcast %c1_i32 : i32 to vector<32x128xi32>
    %65 = arith.cmpi sge, %54, %64 : vector<32x128xi32>
    %66 = arith.andi %57, %65 : vector<32x128xi1>
    %c32_i32_27 = arith.constant 32 : i32
    %67 = vector.broadcast %c32_i32_27 : i32 to vector<32x128xi32>
    %68 = arith.cmpi sle, %54, %67 : vector<32x128xi32>
    %69 = arith.andi %66, %68 : vector<32x128xi1>
    %cst_28 = arith.constant dense<true> : vector<32x128xi1>
    %70 = arith.xori %57, %cst_28 : vector<32x128xi1>
    %c31_i32 = arith.constant 31 : i32
    %71 = vector.broadcast %c31_i32 : i32 to vector<32x128xi32>
    %72 = arith.cmpi sle, %54, %71 : vector<32x128xi32>
    %73 = arith.andi %70, %72 : vector<32x128xi1>
    %74 = arith.ori %69, %73 : vector<32x128xi1>
    %cst_29 = arith.constant dense<true> : vector<32x128xi1>
    %75 = arith.xori %57, %cst_29 : vector<32x128xi1>
    %c32_i32_30 = arith.constant 32 : i32
    %76 = vector.broadcast %c32_i32_30 : i32 to vector<32x128xi32>
    %77 = arith.cmpi eq, %54, %76 : vector<32x128xi32>
    %78 = arith.andi %75, %77 : vector<32x128xi1>
    %cst_31 = arith.constant 0.000000e+00 : f32
    %79 = vector.shape_cast %60 : vector<1x128xf32> to vector<1x128xf32>
    %80 = vector.broadcast %79 : vector<1x128xf32> to vector<32x128xf32>
    %81 = vector.broadcast %cst_31 : f32 to vector<32x128xf32>
    %82 = arith.select %74, %80, %81 : vector<32x128xi1>, vector<32x128xf32>
    %cst_32 = arith.constant 0.000000e+00 : f32
    %83 = vector.shape_cast %63 : vector<1x128xf32> to vector<1x128xf32>
    %84 = vector.broadcast %83 : vector<1x128xf32> to vector<32x128xf32>
    %85 = vector.broadcast %cst_32 : f32 to vector<32x128xf32>
    %86 = arith.select %78, %84, %85 : vector<32x128xi1>, vector<32x128xf32>
    %87 = arith.addf %82, %86 : vector<32x128xf32>
    %88 = arith.mulf %50, %87 : vector<32x128xf32>
    %c0_33 = arith.constant 0 : index
    %c0_34 = arith.constant 0 : index
    %89 = vector.load %arg10[%c0_33, %c0_34] : memref<32x128xf32, #tpu.memory_space<vmem>>, vector<32x128xf32>
    tpu.vector_store %arg10[%c0_33, %c0_34], %88 {strides = array<i32>} : memref<32x128xf32, #tpu.memory_space<vmem>>, vector<32x128xf32>,
    return
  }
  func.func @transform_0(%arg0: i32) -> i32 {
    %c0_i32 = arith.constant 0 : i32
    %c0_i32_0 = arith.constant 0 : i32
    return %c0_i32 : i32
  }
  func.func @transform_1(%arg0: i32) -> (i32, i32) {
    %c0_i32 = arith.constant 0 : i32
    %c0_i32_0 = arith.constant 0 : i32
    return %arg0, %c0_i32 : i32, i32
  }
  func.func @transform_2(%arg0: i32) -> (i32, i32) {
    %c0_i32 = arith.constant 0 : i32
    %c0_i32_0 = arith.constant 0 : i32
    %c0_i32_1 = arith.constant 0 : i32
    return %c0_i32, %c0_i32_0 : i32, i32
  }
  func.func @transform_3(%arg0: i32) -> (i32, i32) {
    %c0_i32 = arith.constant 0 : i32
    %c0_i32_0 = arith.constant 0 : i32
    %c0_i32_1 = arith.constant 0 : i32
    return %c0_i32, %c0_i32_0 : i32, i32
  }
  func.func @transform_4(%arg0: i32) -> (i32, i32) {
    %c0_i32 = arith.constant 0 : i32
    %c0_i32_0 = arith.constant 0 : i32
    %c0_i32_1 = arith.constant 0 : i32
    return %c0_i32, %c0_i32_0 : i32, i32
  }
  func.func @transform_5(%arg0: i32) -> (i32, i32) {
    %c0_i32 = arith.constant 0 : i32
    %c0_i32_0 = arith.constant 0 : i32
    %c0_i32_1 = arith.constant 0 : i32
    return %c0_i32, %c0_i32_0 : i32, i32
  }
  func.func @transform_6(%arg0: i32) -> (i32, i32) {
    %c0_i32 = arith.constant 0 : i32
    %c0_i32_0 = arith.constant 0 : i32
    %c0_i32_1 = arith.constant 0 : i32
    return %c0_i32, %c0_i32_0 : i32, i32
  }
  func.func @transform_7(%arg0: i32) -> (i32, i32) {
    %c0_i32 = arith.constant 0 : i32
    %c0_i32_0 = arith.constant 0 : i32
    %c0_i32_1 = arith.constant 0 : i32
    return %c0_i32, %c0_i32_0 : i32, i32
  }
  func.func @transform_8(%arg0: i32) -> (i32, i32) {
    %c0_i32 = arith.constant 0 : i32
    %c0_i32_0 = arith.constant 0 : i32
    %c0_i32_1 = arith.constant 0 : i32
    return %c0_i32, %c0_i32_0 : i32, i32
  }
  func.func @transform_9(%arg0: i32) -> (i32, i32) {
    %c0_i32 = arith.constant 0 : i32
    %c0_i32_0 = arith.constant 0 : i32
    return %arg0, %c0_i32 : i32, i32
  }
}

</mosaic_0001>

<bundles_post_ra>
// kernel: zip_enhancer_forward.2
= control target key start
LH: loop header
LB: loop body
LE: loop exit
PB: predicated region body
PF: predicated region fallthrough
CT: control target
= control target key end

     0   :  { %8 = vsyncpa [#allocation4], 0  ;;  %s191_s0 = inlined_call_operand.vmem [shape: f32[16,128], index: 0, kind: input, shape index: {}]   ;;  %s192_s1 = inlined_call_operand.hbm [shape: f32[1,1], index: 1, kind: output, shape index: {0}]   ;;  %s193_s2 = inlined_call_operand.hbm [shape: f32[1,1], index: 2, kind: output, shape index: {1}]  }
   0x1   :  { %v18_v0 = vld [vmem:[%s191_s0] sm:$0xff] }
   0x2   :  { %9 = vsyncpa [#allocation6], 0  ;;  %v21_v1 = vmul.f32 %v18_v0, %v18_v0  ;;  %v19_v2 = vld [vmem:[%s191_s0 + $0x8] sm:$0xff]  ;;  %vm16_vm0 = vcmask 0   ;;  %v157_v4 = vmov 0.0   ;;  %s158_s0 = smov [#allocation3]  }
   0x3   :  { %v22_v3 = vmul.f32 %v19_v2, %v19_v2  ;;  %17 = vst.msk [vmem:[#allocation2] sm:$0x1] %vm16_vm0, %v157_v4  ;;  %s73_s13 = sshll.u32 %s158_s0, 4  ;;  %s75_s16 = sshll.u32 %s192_s1, 4  ;;  %s74_s13 = int_to_ptr.vmem [resolvable:$true] %s73_s13  ;;  %s76_s16 = int_to_ptr.hbm [resolvable:$true] %s75_s16 }
   0x4   :  { %23 = vadd.xlane.f32.xlu0 %v21_v1  ;;  %s159_s17 = smov [#allocation5]   ;;  %s86_s21 = sshll.u32 %s193_s2, 4  ;;  %s87_s21 = int_to_ptr.hbm [resolvable:$true] %s86_s21 }
   0x5   :  { %s84_s18 = sshll.u32 %s159_s17, 4  ;;  %s85_s18 = int_to_ptr.vmem [resolvable:$true] %s84_s18 }
   0xa   :  { %v20_v13 = vld [vmem:[#allocation2] sm:$0x1] }
   0xc   :  { %25 = vadd.xlane.f32.xlu0 %v22_v3 }
  0x77   :  { %v24_v5 = vpop.xlane.xlu0 %23 }
  0x7f   :  { %v26_v6 = vpop.xlane.xlu0 %25 }
  0x80   :  { %v27_v7 = vadd.f32 %v26_v6, %v24_v5 }
  0x82   :  { %v28_v8 = vrot.slane %v27_v7, 4 }
  0x84   :  { %v29_v9 = vadd.f32 %v28_v8, %v27_v7 }
  0x86   :  { %v30_v10 = vrot.slane %v29_v9, 2 }
  0x88   :  { %v31_v11 = vadd.f32 %v30_v10, %v29_v9 }
  0x8a   :  { %v32_v12 = vrot.slane %v31_v11, 1 }
  0x8c   :  { %v33_v14 = vadd.f32 %v32_v12, %v31_v11 }
  0x8e   :  { %v34_v15 = vadd.f32 %v33_v14, %v20_v13 }
  0x90   :  { %36 = vst.msk [vmem:[#allocation2] sm:$0x1] %vm16_vm0, %v34_v15 }
  0x97   :  { %v40_v16 = vld [vmem:[#allocation2] sm:$0x1] }
  0x98   :  { %v41_v17 = vmul.f32 4.5474735e-13, %v40_v16 }
  0x9a   :  { %v42_v18 = vadd.f32 1e-06, %v41_v17 }
  0x9c   :  { %103 = vrsqrt.f32 %v42_v18  ;;  %vm62_vm2 = vweird.f32 %v42_v18  ;;  %vm50_vm4 = vcmp.eq.f32.partialorder %v42_v18, inf  ;;  %v53_v28 = vand.u32 2147483648, %v42_v18 }
  0x9d   :  { %vm52_vm5 = vcmp.eq.f32.partialorder %v42_v18, 0.0 }
  0xa2   :  { %v104_v19 = vpop.eup %103 }
  0xa3   :  { %v44_v20 = vmul.f32 %v104_v19, %v42_v18  ;;  %vm63_vm1 = vweird.f32 %v104_v19 }
  0xa4   :  { %vm64_vm3 = vmor %vm62_vm2, %vm63_vm1 }
  0xa5   :  { %v45_v21 = vmul.f32 %v104_v19, %v44_v20 }
  0xa7   :  { %v46_v22 = vmul.f32 0.5, %v45_v21 }
  0xa9   :  { %v47_v23 = vsub.f32 1.5, %v46_v22 }
  0xab   :  { %v48_v24 = vmul.f32 %v104_v19, %v47_v23 }
  0xad   :  { %v49_v25 = vmul.f32 %v48_v24, %v42_v18  ;;  %v65_v26 = vsel %vm64_vm3, %v104_v19, %v48_v24 }
  0xae   :  { %v66_v27 = vmul.f32 3.0517578e-05, %v65_v26 }
  0xaf   :  { %v51_v29 = vsel %vm50_vm4, %v42_v18, %v49_v25 }
  0xb0   :  { %67 = vst.msk [vmem:[#allocation3] sm:$0x1] %vm16_vm0, %v66_v27  ;;  %v54_v30 = vsel %vm52_vm5, %v53_v28, %v51_v29 }
  0xb1   :  { %78 = dma.vmem_to_hbm [thread:$0]  %s74_s13, 16, %s76_s16, [#allocation4]   ;;  %55 = vst.msk [vmem:[#allocation5] sm:$0x1] %vm16_vm0, %v54_v30 }
  0xb2   :  { %89 = dma.vmem_to_hbm [thread:$0]  %s85_s18, 16, %s87_s21, [#allocation6]  }
  0xb3   :  { %153 = dma.done.wait [#allocation4], 16  }
  0xb4   :  { %154 = vsyncadd [#allocation4], 4294967280 }
  0xb5   :  { %155 = dma.done.wait [#allocation6], 16  }
  0xb6   :  { %156 = vsyncadd [#allocation6], 4294967280 }
  0xb7   :  { %98 = vsyncpa [#allocation4], 1 }
  0xb8   :  { %99 = vsyncpa [#allocation6], 1 }

// kernel: zip_enhancer_forward.3
= control target key start
LH: loop header
LB: loop body
LE: loop exit
PB: predicated region body
PF: predicated region fallthrough
CT: control target
= control target key end

     0   :  { %14 = vsyncpa [#allocation3], 0  ;;  %s1523_s30 = smov 0   ;;  %s1862_s0 = inlined_call_operand.vmem [shape: f32[2], index: 0, kind: input, shape index: {}]   ;;  %s1863_s1 = inlined_call_operand.vmem [shape: f32[64,128], index: 1, kind: input, shape index: {}]   ;;  %s1864_s2 = inlined_call_operand.vmem [shape: bf16[128,256], index: 2, kind: input, shape index: {}]   ;;  %s1865_s3 = inlined_call_operand.vmem [shape: bf16[256,128], index: 3, kind: input, shape index: {}]   ;;  %s1866_s4 = inlined_call_operand.vmem [shape: bf16[128,128], index: 4, kind: input, shape index: {}]   ;;  %s1867_s5 = inlined_call_operand.vmem [shape: f32[1,128], index: 5, kind: input, shape index: {}]   ;;  %s1868_s6 = inlined_call_operand.vmem [shape: bf16[128,128], index: 6, kind: input, shape index: {}]   ;;  %s1869_s7 = inlined_call_operand.vmem [shape: f32[1,128], index: 7, kind: input, shape index: {}]   ;;  %s1870_s8 = inlined_call_operand.vmem [shape: f32[2,128], index: 8, kind: input, shape index: {}]   ;;  %s1871_s9 = inlined_call_operand.vmem [shape: f32[64,128], index: 9, kind: output, shape index: {}]  }
   0x1 LB: > { %s1529_s10 = sadd.s32 4294967295, %s1469_s30   ;;  %p1113_p0 = scmp.ge.s32.totalorder %s1469_s30, 1  ;;  %s1469_s30 = sphi %s1523_s30, %s20_s30  }
   0x2   : > { %p245_p1 = scmp.lt.s32.totalorder %s1469_s30, 3  ;;  %s257_s13 = sshll.u32 %s1862_s0, 4  ;;  %s258_s13 = int_to_ptr.vmem [resolvable:$true] %s257_s13 }
   0x3   : > { %p1390_p3 = scmp.eq.s32.totalorder %s1529_s10, 0  ;;  %s1471_s14 = smov [#allocation2]  }
   0x4   : > { %p246_p2 = pnand %p1113_p0, %p245_p1 }
   0x6   : > { %p1386_p4 = pneg %p246_p2  ;;  %300 = sbr.rel (%p246_p2) target bundleno = 701 (0x2bd), region = 56 }
   0x8   : > { %p1387_p5 = pnand %p1390_p3, %p1386_p4 }
   0xa   : > { %1389 = dma.vmem_to_smem (!%p1387_p5), %s258_s13, 16, %s1471_s14, [#allocation3]  }
   0xb   : > { %1464 = dma.done.wait (%p1390_p3), [#allocation3], 16  }
   0xc   : > { %1466 = vsyncadd (%p1390_p3), [#allocation3], 4294967280 }
   0xd   : > { %307 = sfence }
   0xe   : > { %v1181_v0 = vld [vmem:[%s1864_s2 + $0x70] sm:$0xf]  ;;  %v1333_v1 = vld [vmem:[%s1864_s2 + $0x74] sm:$0xf0]  ;;  %v1332_v2 = vld [vmem:[%s1864_s2 + $0x74] sm:$0xf] }
   0xf   : > { %v1182_v3 = vor.u32 %v1333_v1, %v1181_v0  ;;  %v1183_v4 = vld [vmem:[%s1864_s2 + $0x78] sm:$0xf0]  ;;  %v1173_v5 = vld [vmem:[%s1864_s2 + $0x60] sm:$0xf]  ;;  %v1331_v6 = vld [vmem:[%s1864_s2 + $0x64] sm:$0xf0] }
  0x10   : > { %v1186_v7 = vor.u32 %v1332_v2, %v1183_v4  ;;  %v1330_v8 = vld [vmem:[%s1864_s2 + $0x64] sm:$0xf]  ;;  %v1175_v9 = vld [vmem:[%s1864_s2 + $0x68] sm:$0xf0]  ;;  %v1174_v10 = vor.u32 %v1331_v6, %v1173_v5  ;;  %v1165_v12 = vld [vmem:[%s1864_s2 + $0x50] sm:$0xf] }
  0x11   : > { %459 = vmatpush.bf16.msra.mxu0 %v1182_v3  ;;  %v1178_v11 = vor.u32 %v1330_v8, %v1175_v9  ;;  %v1329_v13 = vld [vmem:[%s1864_s2 + $0x54] sm:$0xf0]  ;;  %v1328_v14 = vld [vmem:[%s1864_s2 + $0x54] sm:$0xf]  ;;  %v1167_v15 = vld [vmem:[%s1864_s2 + $0x58] sm:$0xf0] }
  0x12   : > { %478 = vmatpush.bf16.msra.mxu1 %v1186_v7  ;;  %v1166_v16 = vor.u32 %v1329_v13, %v1165_v12  ;;  %v1170_v17 = vor.u32 %v1328_v14, %v1167_v15  ;;  %v1157_v18 = vld [vmem:[%s1864_s2 + $0x40] sm:$0xf]  ;;  %v1327_v19 = vld [vmem:[%s1864_s2 + $0x44] sm:$0xf0]  ;;  %v1326_v20 = vld [vmem:[%s1864_s2 + $0x44] sm:$0xf] }
  0x13   : > { %v1159_v21 = vld [vmem:[%s1864_s2 + $0x48] sm:$0xf0]  ;;  %s1118_s28 = sshll.u32 %s1529_s10, 2  ;;  %v1158_v22 = vor.u32 %v1327_v19, %v1157_v18  ;;  %v1149_v24 = vld [vmem:[%s1864_s2 + $0x30] sm:$0xf]  ;;  %s350_s18 = sld [smem:[#allocation2]] }
  0x14   : > { %p339_p6 = scmp.lt.s32.totalorder %s1118_s28, 7  ;;  %v1162_v23 = vor.u32 %v1326_v20, %v1159_v21  ;;  %v1325_v25 = vld [vmem:[%s1864_s2 + $0x34] sm:$0xf0]  ;;  %v1324_v26 = vld [vmem:[%s1864_s2 + $0x34] sm:$0xf]  ;;  %v1339_v61 = vld [vmem:[%s1866_s4 + $0x28] sm:$0xff] }
  0x15   : > { %460 = vmatpush.bf16.msra.mxu0 %v1174_v10  ;;  %v1151_v27 = vld [vmem:[%s1864_s2 + $0x38] sm:$0xf0]  ;;  %v1150_v28 = vor.u32 %v1325_v25, %v1149_v24  ;;  %v1141_v30 = vld [vmem:[%s1864_s2 + $0x20] sm:$0xf]  ;;  %v1323_v31 = vld [vmem:[%s1864_s2 + $0x24] sm:$0xf0] }
  0x16   : > { %479 = vmatpush.bf16.msra.mxu1 %v1178_v11  ;;  %s1875_s28 = smov (!%p339_p6, %s1118_s28), 7  ;;  %v1154_v29 = vor.u32 %v1324_v26, %v1151_v27  ;;  %v1322_v32 = vld [vmem:[%s1864_s2 + $0x24] sm:$0xf]  ;;  %v1143_v33 = vld [vmem:[%s1864_s2 + $0x28] sm:$0xf0]  ;;  %v1142_v34 = vor.u32 %v1323_v31, %v1141_v30  ;;  %v1341_v59 = vld [vmem:[%s1866_s4 + $0x38] sm:$0xff] }
  0x17   : > { %s1119_s27 = sshll.u32 %s1875_s28, 3  ;;  %v1146_v35 = vor.u32 %v1322_v32, %v1143_v33  ;;  %v1133_v36 = vld [vmem:[%s1864_s2 + $0x10] sm:$0xf]  ;;  %v1321_v37 = vld [vmem:[%s1864_s2 + $0x14] sm:$0xf0]  ;;  %603 = vmatpush.bf16.msra.mxu2 %v1341_v59  ;;  %v1338_v62 = vld [vmem:[%s1866_s4 + $0x20] sm:$0xff] }
  0x18   : > { %s342_s16 = scalar_lea.vmem %s1863_s1, %s1119_s27  ;;  %v1320_v38 = vld [vmem:[%s1864_s2 + $0x14] sm:$0xf]  ;;  %v1135_v39 = vld [vmem:[%s1864_s2 + $0x18] sm:$0xf0]  ;;  %v1134_v40 = vor.u32 %v1321_v37, %v1133_v36  ;;  %v1125_v45 = vld [vmem:[%s1864_s2] sm:$0xf]  ;;  %s1843_s20 = scalar_lea.vmem %s1871_s9, %s1119_s27 }
  0x19   : > { %461 = vmatpush.bf16.msra.mxu0 %v1166_v16  ;;  %v352_v41 = vld [vmem:[%s342_s16] sm:$0xff]  ;;  %v353_v42 = vld [vmem:[%s342_s16 + $0x8] sm:$0xff]  ;;  %v356_v43 = vstv %s350_s18  ;;  %v1138_v44 = vor.u32 %v1320_v38, %v1135_v39  ;;  %v354_v54 = vld [vmem:[%s342_s16 + $0x10] sm:$0xff]  ;;  %s1315_s18 = sshll.u32 %s1529_s10, 5  ;;  %s1122_s13 = sld [smem:[#allocation2 + $0x1]]  ;;  %vm1472_vm4 = vmmov 1  }
  0x1a   : > { %480 = vmatpush.bf16.msra.mxu1 %v1170_v17  ;;  %v1319_v46 = vld [vmem:[%s1864_s2 + $0x4] sm:$0xf0]  ;;  %v1318_v47 = vld [vmem:[%s1864_s2 + $0x4] sm:$0xf]  ;;  %v1127_v48 = vld [vmem:[%s1864_s2 + $0x8] sm:$0xf0]  ;;  %v357_v49 = vmul.f32 %v356_v43, %v352_v41  ;;  %v358_v50 = vmul.f32 %v356_v43, %v353_v42  ;;  %v359_v56 = vmul.f32 %v356_v43, %v354_v54 }
  0x1b   : > { %v1126_v51 = vor.u32 %v1319_v46, %v1125_v45  ;;  %v1130_v52 = vor.u32 %v1318_v47, %v1127_v48  ;;  %v355_v55 = vld [vmem:[%s342_s16 + $0x18] sm:$0xff]  ;;  %v1340_v60 = vld [vmem:[%s1866_s4 + $0x30] sm:$0xff]  ;;  %v1335_v1 = vld [vmem:[%s1866_s4 + $0x8] sm:$0xff] }
  0x1c   : > { %v361_v53 = vpack.c.bf16 %v358_v50, %v357_v49  ;;  %v360_v57 = vmul.f32 %v356_v43, %v355_v55  ;;  %604 = vmatpush.bf16.msra.mxu2 %v1340_v60  ;;  %v1337_v63 = vld [vmem:[%s1866_s4 + $0x18] sm:$0xff]  ;;  %v1336_v0 = vld [vmem:[%s1866_s4 + $0x10] sm:$0xff]  ;;  %v1334_v5 = vld [vmem:[%s1866_s4] sm:$0xff] }
  0x1d   : > { %462 = vmatpush.bf16.msra.mxu0 %v1158_v22  ;;  %v1349_v25 = vld [vmem:[%s1868_s6 + $0x38] sm:$0xff]  ;;  %v1347_v36 = vld [vmem:[%s1868_s6 + $0x28] sm:$0xff]  ;;  %v1344_v54 = vld [vmem:[%s1868_s6 + $0x10] sm:$0xff] }
  0x1e   : > { %481 = vmatpush.bf16.msra.mxu1 %v1162_v23  ;;  %v362_v58 = vpack.c.bf16 %v360_v57, %v359_v56  ;;  %692 = vmatpush.bf16.msra.mxu3 %v1349_v25  ;;  %v1343_v55 = vld [vmem:[%s1868_s6 + $0x8] sm:$0xff]  ;;  %v1342_v56 = vld [vmem:[%s1868_s6] sm:$0xff] }
  0x1f   : > { %v1403_v25 = vld [vmem:[%s1869_s7] ss:$0 sm:$0xff] }
  0x20   : > { %605 = vmatpush.bf16.msra.mxu2 %v1339_v61 }
  0x21   : > { %463 = vmatpush.bf16.msra.mxu0 %v1150_v28 }
  0x22   : > { %482 = vmatpush.bf16.msra.mxu1 %v1154_v29  ;;  %v1348_v29 = vld [vmem:[%s1868_s6 + $0x30] sm:$0xff] }
  0x23   : > { %693 = vmatpush.bf16.msra.mxu3 %v1348_v29 }
  0x24   : > { %606 = vmatpush.bf16.msra.mxu2 %v1338_v62 }
  0x25   : > { %464 = vmatpush.bf16.msra.mxu0 %v1142_v34 }
  0x26   : > { %483 = vmatpush.bf16.msra.mxu1 %v1146_v35 }
  0x27   : > { %694 = vmatpush.bf16.msra.mxu3 %v1347_v36  ;;  %v1359_v36 = vld [vmem:[%s1865_s3 + $0x48] sm:$0xff] }
  0x28   : > { %607 = vmatpush.bf16.msra.mxu2 %v1337_v63 }
  0x29   : > { %465 = vmatpush.bf16.msra.mxu0 %v1134_v40 }
  0x2a   : > { %484 = vmatpush.bf16.msra.mxu1 %v1138_v44 }
  0x2c   : > { %608 = vmatpush.bf16.msra.mxu2 %v1336_v0 }
  0x2d   : > { %466 = vmatpush.bf16.msra.mxu0 %v1126_v51 }
  0x2e   : > { %485 = vmatpush.bf16.msra.mxu1 %v1130_v52  ;;  %v1346_v52 = vld [vmem:[%s1868_s6 + $0x20] sm:$0xff] }
  0x2f   : > { %695 = vmatpush.bf16.msra.mxu3 %v1346_v52 }
  0x30   : > { %467 = vmatmul.bf16.vlgmr.msra.gmra.mxu0 %v361_v53  ;;  %609 = vmatpush.bf16.msra.mxu2 %v1335_v1 }
  0x31   : > { %486 = vmatmul.bf16.vlgmr.msra.gmra.mxu1 %v361_v53  ;;  %v1345_v53 = vld [vmem:[%s1868_s6 + $0x18] sm:$0xff] }
  0x33   : > { %696 = vmatpush.bf16.msra.mxu3 %v1345_v53 }
  0x34   : > { %610 = vmatpush.bf16.msra.mxu2 %v1334_v5 }
  0x37   : > { %697 = vmatpush.bf16.msra.mxu3 %v1344_v54 }
  0x3b   : > { %698 = vmatpush.bf16.msra.mxu3 %v1343_v55 }
  0x3f   : > { %699 = vmatpush.bf16.msra.mxu3 %v1342_v56 }
  0x40   : > { %472 = vmatmul.bf16.gmra.mxu0 %v362_v58 }
  0x41   : > { %491 = vmatmul.bf16.gmra.mxu1 %v362_v58  ;;  %v1402_v58 = vld [vmem:[%s1867_s5] ss:$0 sm:$0xff] }
  0xad   : > { %v1663_v2 = vpop.f32.mrf.mxu0 }
  0xae   : > { %v497_v3 = vmul.f32 %v1663_v2, %v1663_v2  ;;  %v1667_v4 = vpop.f32.mrf.mxu1 }
  0xaf   : > { %v501_v6 = vmul.f32 %v1667_v4, %v1667_v4 }
  0xb1   : > { %v505_v7 = vadd.f32 %v501_v6, %v497_v3 }
  0xb3   : > { %v509_v8 = vadd.f32 1e-12, %v505_v7 }
  0xb5   : > { %1404 = vlog2.f32 %v509_v8  ;;  %v1674_v9 = vpop.f32.mrf.mxu0 }
  0xb6   : > { %v498_v10 = vmul.f32 %v1674_v9, %v1674_v9  ;;  %v1678_v11 = vpop.f32.mrf.mxu1 }
  0xb7   : > { %v502_v12 = vmul.f32 %v1678_v11, %v1678_v11 }
  0xb9   : > { %v506_v13 = vadd.f32 %v502_v12, %v498_v10  ;;  %v1357_v12 = vld [vmem:[%s1865_s3 + $0x38] sm:$0xff] }
  0xba   : > { %927 = vmatpush.bf16.msrb.mxu0 %v1357_v12  ;;  %1366 = vmatpush.bf16.msrb.mxu2 %v1357_v12 }
  0xbb   : > { %v1405_v14 = vpop.eup %1404  ;;  %v510_v15 = vadd.f32 1e-12, %v506_v13  ;;  %v1365_v13 = vld [vmem:[%s1865_s3 + $0x78] sm:$0xff] }
  0xbc   : > { %v1682_v16 = vmul.f32 0.6931472, %v1405_v14  ;;  %946 = vmatpush.bf16.msrb.mxu1 %v1365_v13  ;;  %1374 = vmatpush.bf16.msrb.mxu3 %v1365_v13  ;;  %v1356_v14 = vld [vmem:[%s1865_s3 + $0x30] sm:$0xff] }
  0xbd   : > { %1406 = vlog2.f32 %v510_v15  ;;  %v1684_v17 = vpop.f32.mrf.mxu0  ;;  %v1364_v15 = vld [vmem:[%s1865_s3 + $0x70] sm:$0xff] }
  0xbe   : > { %v499_v18 = vmul.f32 %v1684_v17, %v1684_v17  ;;  %v1688_v19 = vpop.f32.mrf.mxu1  ;;  %v521_v21 = vmul.f32 0.15, %v1682_v16  ;;  %928 = vmatpush.bf16.msrb.mxu0 %v1356_v14  ;;  %1367 = vmatpush.bf16.msrb.mxu2 %v1356_v14  ;;  %v743_v53 = vmul.f32 0.5, %v1682_v16 }
  0xbf   : > { %v503_v20 = vmul.f32 %v1688_v19, %v1688_v19 }
  0xc0   : > { %v525_v28 = vmul.f32 1.442695, %v521_v21  ;;  %947 = vmatpush.bf16.msrb.mxu1 %v1364_v15  ;;  %1375 = vmatpush.bf16.msrb.mxu3 %v1364_v15  ;;  %v1354_v21 = vld [vmem:[%s1865_s3 + $0x20] sm:$0xff] }
  0xc1   : > { %v507_v22 = vadd.f32 %v503_v20, %v499_v18  ;;  %v1355_v18 = vld [vmem:[%s1865_s3 + $0x28] sm:$0xff] }
  0xc2   : > { %v1363_v20 = vld [vmem:[%s1865_s3 + $0x68] sm:$0xff]  ;;  %929 = vmatpush.bf16.msrb.mxu0 %v1355_v18  ;;  %1368 = vmatpush.bf16.msrb.mxu2 %v1355_v18 }
  0xc3   : > { %v1407_v23 = vpop.eup %1406  ;;  %v511_v24 = vadd.f32 1e-12, %v507_v22  ;;  %v1362_v22 = vld [vmem:[%s1865_s3 + $0x60] sm:$0xff] }
  0xc4   : > { %v1696_v26 = vmul.f32 0.6931472, %v1407_v23  ;;  %948 = vmatpush.bf16.msrb.mxu1 %v1363_v20  ;;  %1376 = vmatpush.bf16.msrb.mxu3 %v1363_v20  ;;  %v1353_v23 = vld [vmem:[%s1865_s3 + $0x18] sm:$0xff] }
  0xc5   : > { %1408 = vlog2.f32 %v511_v24  ;;  %v1698_v27 = vpop.f32.mrf.mxu0  ;;  %v1361_v24 = vld [vmem:[%s1865_s3 + $0x58] sm:$0xff] }
  0xc6   : > { %v522_v30 = vmul.f32 0.15, %v1696_v26  ;;  %v500_v31 = vmul.f32 %v1698_v27, %v1698_v27  ;;  %v1706_v32 = vpop.f32.mrf.mxu1  ;;  %1410 = vpow2.f32 %v525_v28  ;;  %930 = vmatpush.bf16.msrb.mxu0 %v1354_v21  ;;  %1369 = vmatpush.bf16.msrb.mxu2 %v1354_v21 }
  0xc7   : > { %v504_v33 = vmul.f32 %v1706_v32, %v1706_v32 }
  0xc8   : > { %v527_v34 = vmul.f32 1.442695, %v522_v30  ;;  %949 = vmatpush.bf16.msrb.mxu1 %v1362_v22  ;;  %1377 = vmatpush.bf16.msrb.mxu3 %v1362_v22  ;;  %v1352_v30 = vld [vmem:[%s1865_s3 + $0x10] sm:$0xff] }
  0xc9   : > { %v508_v35 = vadd.f32 %v504_v33, %v500_v31  ;;  %v1360_v31 = vld [vmem:[%s1865_s3 + $0x50] sm:$0xff] }
  0xca   : > { %1412 = vpow2.f32 %v527_v34  ;;  %931 = vmatpush.bf16.msrb.mxu0 %v1353_v23  ;;  %1370 = vmatpush.bf16.msrb.mxu2 %v1353_v23 }
  0xcb   : > { %v1409_v37 = vpop.eup %1408  ;;  %v512_v38 = vadd.f32 1e-12, %v508_v35  ;;  %v1351_v35 = vld [vmem:[%s1865_s3 + $0x8] sm:$0xff] }
  0xcc   : > { %v1713_v39 = vmul.f32 0.6931472, %v1409_v37  ;;  %v1715_v40 = vpop.eup %1410  ;;  %950 = vmatpush.bf16.msrb.mxu1 %v1361_v24  ;;  %1378 = vmatpush.bf16.msrb.mxu3 %v1361_v24 }
  0xcd   : > { %1414 = vlog2.f32 %v512_v38 }
  0xce   : > { %v523_v42 = vmul.f32 0.15, %v1713_v39  ;;  %932 = vmatpush.bf16.msrb.mxu0 %v1352_v30  ;;  %1371 = vmatpush.bf16.msrb.mxu2 %v1352_v30  ;;  %v745_v12 = vmul.f32 0.5, %v1713_v39 }
  0xd0   : > { %v1717_v41 = vpop.eup %1412  ;;  %v529_v46 = vmul.f32 1.442695, %v523_v42  ;;  %951 = vmatpush.bf16.msrb.mxu1 %v1360_v31  ;;  %1379 = vmatpush.bf16.msrb.mxu3 %v1360_v31  ;;  %v1350_v42 = vld [vmem:[%s1865_s3] sm:$0xff] }
  0xd1   : > { %v533_v43 = vpack.c.bf16 %v1717_v41, %v1715_v40 }
  0xd2   : > { %1416 = vpow2.f32 %v529_v46  ;;  %933 = vmatpush.bf16.msrb.mxu0 %v1351_v35  ;;  %1372 = vmatpush.bf16.msrb.mxu2 %v1351_v35 }
  0xd3   : > { %v1415_v44 = vpop.eup %1414  ;;  %611 = vmatmul.bf16.vlgmr.msra.gmra.mxu2 %v533_v43  ;;  %v1358_v43 = vld [vmem:[%s1865_s3 + $0x40] sm:$0xff] }
  0xd4   : > { %v1722_v45 = vmul.f32 0.6931472, %v1415_v44  ;;  %952 = vmatpush.bf16.msrb.mxu1 %v1359_v36  ;;  %1380 = vmatpush.bf16.msrb.mxu3 %v1359_v36 }
  0xd6   : > { %v524_v47 = vmul.f32 0.15, %v1722_v45  ;;  %934 = vmatpush.bf16.msrb.mxu0 %v1350_v42  ;;  %1373 = vmatpush.bf16.msrb.mxu2 %v1350_v42  ;;  %v746_v39 = vmul.f32 0.5, %v1722_v45 }
  0xd8   : > { %v531_v48 = vmul.f32 1.442695, %v524_v47  ;;  %v1725_v49 = vpop.eup %1416  ;;  %953 = vmatpush.bf16.msrb.mxu1 %v1358_v43  ;;  %1381 = vmatpush.bf16.msrb.mxu3 %v1358_v43 }
  0xda   : > { %1418 = vpow2.f32 %v531_v48 }
  0xe0   : > { %v1727_v50 = vpop.eup %1418 }
  0xe1   : > { %v534_v51 = vpack.c.bf16 %v1727_v50, %v1725_v49 }
  0xe3   : > { %616 = vmatmul.bf16.gmra.mxu2 %v534_v51 }
 0x156   : > { %v612_v57 = vpop.f32.mrf.mxu2 }
 0x157   : > { %v613_v59 = vadd.f32 %v1402_v58, %v612_v57 }
 0x159   : > { %1420 = vtanh.f32 %v613_v59 }
 0x15e   : > { %v614_v60 = vpop.f32.mrf.mxu2 }
 0x15f   : > { %v615_v61 = vadd.f32 %v1402_v58, %v614_v60  ;;  %v1421_v62 = vpop.eup %1420 }
 0x161   : > { %1422 = vtanh.f32 %v615_v61 }
 0x166   : > { %v617_v63 = vpop.f32.mrf.mxu2 }
 0x167   : > { %v1423_v0 = vpop.eup %1422  ;;  %v618_v3 = vadd.f32 %v1402_v58, %v617_v63 }
 0x168   : > { %v626_v1 = vpack.c.bf16 %v1423_v0, %v1421_v62  ;;  %v744_v0 = vmul.f32 0.5, %v1696_v26 }
 0x169   : > { %1424 = vtanh.f32 %v618_v3 }
 0x16a   : > { %700 = vmatmul.bf16.vlgmr.msra.gmra.mxu3 %v626_v1 }
 0x16e   : > { %v619_v5 = vpop.f32.mrf.mxu2 }
 0x16f   : > { %v620_v6 = vadd.f32 %v1402_v58, %v619_v5  ;;  %v1425_v7 = vpop.eup %1424 }
 0x171   : > { %1426 = vtanh.f32 %v620_v6 }
 0x177   : > { %v1427_v8 = vpop.eup %1426 }
 0x178   : > { %v627_v10 = vpack.c.bf16 %v1427_v8, %v1425_v7 }
 0x17a   : > { %705 = vmatmul.bf16.gmra.mxu3 %v627_v10 }
 0x1ed   : > { %v701_v28 = vpop.f32.mrf.mxu3 }
 0x1ee   : > { %v711_v29 = vadd.f32 %v1715_v40, %v701_v28 }
 0x1f0   : > { %v719_v33 = vadd.f32 %v1403_v25, %v711_v29 }
 0x1f2   : > { %v723_v34 = vmax.f32 %v719_v33, 0.0 }
 0x1f4   : > { %v727_v37 = vadd.f32 1e-12, %v723_v34 }
 0x1f5   : > { %v703_v38 = vpop.f32.mrf.mxu3 }
 0x1f6   : > { %1428 = vlog2.f32 %v727_v37  ;;  %v712_v40 = vadd.f32 %v1717_v41, %v703_v38 }
 0x1f8   : > { %v720_v44 = vadd.f32 %v1403_v25, %v712_v40 }
 0x1fa   : > { %v724_v46 = vmax.f32 %v720_v44, 0.0 }
 0x1fc   : > { %v1429_v47 = vpop.eup %1428  ;;  %v728_v48 = vadd.f32 1e-12, %v724_v46 }
 0x1fd   : > { %v732_v51 = vmul.f32 0.6931472, %v1429_v47  ;;  %v706_v41 = vpop.f32.mrf.mxu3 }
 0x1fe   : > { %1430 = vlog2.f32 %v728_v48  ;;  %v713_v52 = vadd.f32 %v1725_v49, %v706_v41 }
 0x1ff   : > { %v739_v54 = vmul.f32 3.3333333, %v732_v51 }
 0x200   : > { %v721_v55 = vadd.f32 %v1403_v25, %v713_v52 }
 0x201   : > { %v747_v56 = vsub.f32 %v739_v54, %v743_v53 }
 0x202   : > { %v725_v57 = vmax.f32 %v721_v55, 0.0  ;;  %v971_v55 = vstv %s1315_s18 }
 0x203   : > { %v751_v58 = vmul.f32 1.442695, %v747_v56 }
 0x204   : > { %v1431_v59 = vpop.eup %1430  ;;  %v729_v60 = vadd.f32 1e-12, %v725_v57  ;;  %v979_v57 = vld [vmem:[%s1870_s8] sm:$0x1] }
 0x205   : > { %v734_v61 = vmul.f32 0.6931472, %v1431_v59  ;;  %v708_v62 = vpop.f32.mrf.mxu3  ;;  %v982_v59 = vld [vmem:[%s1870_s8 + $0x1] sm:$0x1] }
 0x206   : > { %1432 = vlog2.f32 %v729_v60  ;;  %v714_v63 = vadd.f32 %v1727_v50, %v708_v62 }
 0x207   : > { %1434 = vpow2.f32 %v751_v58  ;;  %v740_v1 = vmul.f32 3.3333333, %v734_v61  ;;  %v980_v58 = vstv %s1122_s13 }
 0x208   : > { %v722_v3 = vadd.f32 %v1403_v25, %v714_v63  ;;  %v981_v62 = vmul.f32 %v980_v58, %v979_v57  ;;  %v983_v63 = vmul.f32 %v982_v59, %v980_v58 }
 0x209   : > { %v748_v49 = vsub.f32 %v740_v1, %v744_v0 }
 0x20a   : > { %v726_v5 = vmax.f32 %v722_v3, 0.0  ;;  %v1021_v0 = vperm.slane %v981_v62, 0  ;;  %v1026_v1 = vperm.slane %v983_v63, 0 }
 0x20b   : > { %v753_v16 = vmul.f32 1.442695, %v748_v49 }
 0x20c   : > { %v1433_v6 = vpop.eup %1432  ;;  %v730_v7 = vadd.f32 1e-12, %v726_v5 }
 0x20d   : > { %v1435_v8 = vpop.eup %1434  ;;  %1436 = vpow2.f32 %v753_v16  ;;  %v736_v10 = vmul.f32 0.6931472, %v1433_v6 }
 0x20e   : > { %1438 = vlog2.f32 %v730_v7  ;;  %v759_v14 = vmul.f32 %v1435_v8, %v1663_v2  ;;  %v767_v50 = vmul.f32 %v1435_v8, %v1667_v4 }
 0x20f   : > { %v741_v13 = vmul.f32 3.3333333, %v736_v10 }
 0x210   : > { %v763_v22 = vpack.c.bf16 %v759_v14, %v759_v14  ;;  %v771_v24 = vpack.c.bf16 %v767_v50, %v767_v50 }
 0x211   : > { %v749_v26 = vsub.f32 %v741_v13, %v745_v12 }
 0x212   : > { %v779_v2 = vunpack.c.l.b16 %v763_v22  ;;  %v791_v4 = vunpack.c.l.b16 %v771_v24 }
 0x213   : > { %v1437_v15 = vpop.eup %1436  ;;  %v755_v18 = vmul.f32 1.442695, %v749_v26 }
 0x214   : > { %v1439_v20 = vpop.eup %1438  ;;  %v760_v21 = vmul.f32 %v1437_v15, %v1674_v9  ;;  %v768_v23 = vmul.f32 %v1437_v15, %v1678_v11 }
 0x215   : > { %v738_v25 = vmul.f32 0.6931472, %v1439_v20  ;;  %1440 = vpow2.f32 %v755_v18 }
 0x216   : > { %v764_v28 = vpack.c.bf16 %v760_v21, %v760_v21  ;;  %v772_v29 = vpack.c.bf16 %v768_v23, %v768_v23 }
 0x217   : > { %v742_v30 = vmul.f32 3.3333333, %v738_v25 }
 0x218   : > { %v780_v31 = vunpack.c.l.b16 %v764_v28  ;;  %v792_v33 = vunpack.c.l.b16 %v772_v29 }
 0x219   : > { %v750_v34 = vsub.f32 %v742_v30, %v746_v39 }
 0x21a   : > { %v783_v35 = vpack.c.b16 %v780_v31, %v779_v2  ;;  %v795_v36 = vpack.c.b16 %v792_v33, %v791_v4 }
 0x21b   : > { %v757_v37 = vmul.f32 1.442695, %v750_v34  ;;  %v1441_v9 = vpop.eup %1440 }
 0x21c   : > { %935 = vmatmul.bf16.vlgmr.msrb.gmra.mxu0 %v783_v35  ;;  %954 = vmatmul.bf16.vlgmr.msrb.gmra.mxu1 %v795_v36  ;;  %v761_v11 = vmul.f32 %v1441_v9, %v1684_v17  ;;  %v769_v38 = vmul.f32 %v1441_v9, %v1688_v19  ;;  %v966_v17 = vlaneseq }
 0x21d   : > { %1442 = vpow2.f32 %v757_v37 }
 0x21e   : > { %v765_v42 = vpack.c.bf16 %v761_v11, %v761_v11  ;;  %v773_v44 = vpack.c.bf16 %v769_v38, %v769_v38  ;;  %v967_v19 = vshrl.u32 %v966_v17, 7  ;;  %v977_v56 = vand.u32 127, %v966_v17 }
 0x220   : > { %v781_v48 = vunpack.c.l.b16 %v765_v42  ;;  %v793_v41 = vunpack.c.l.b16 %v773_v44  ;;  %vm978_vm0 = vcmp.lt.s32.totalorder %v977_v56, 64  ;;  %v969_v3 = vadd.s32 16, %v967_v19 }
 0x221   : > { %vm1825_vm5 = vmxor %vm978_vm0, %vm1472_vm4  ;;  %v970_v50 = vadd.s32 24, %v967_v19 }
 0x222   : > { %v974_v6 = vadd.s32 %v971_v55, %v969_v3 }
 0x223   : > { %v1443_v40 = vpop.eup %1442  ;;  %v975_v20 = vadd.s32 %v971_v55, %v970_v50 }
 0x224   : > { %v762_v45 = vmul.f32 %v1443_v40, %v1698_v27  ;;  %v770_v43 = vmul.f32 %v1443_v40, %v1706_v32  ;;  %v972_v27 = vadd.s32 %v971_v55, %v967_v19  ;;  %v968_v32 = vadd.s32 8, %v967_v19 }
 0x226   : > { %v766_v46 = vpack.c.bf16 %v762_v45, %v762_v45  ;;  %v774_v47 = vpack.c.bf16 %v770_v43, %v770_v43  ;;  %vm984_vm1 = vcmp.ge.s32.totalorder %v972_v27, 1  ;;  %vm992_vm3 = vcmp.le.s32.totalorder %v972_v27, 32 }
 0x227   : > { %vm988_vm2 = vmand %vm978_vm0, %vm984_vm1  ;;  %vm1001_vm6 = vcmp.le.s32.totalorder %v972_v27, 31  ;;  %v973_v61 = vadd.s32 %v971_v55, %v968_v32  ;;  %vm1013_vm9 = vcmp.eq.s32.totalorder %v972_v27, 32 }
 0x228   : > { %v782_v51 = vunpack.c.l.b16 %v766_v46  ;;  %v794_v52 = vunpack.c.l.b16 %v774_v47  ;;  %vm996_vm7 = vmand %vm988_vm2, %vm992_vm3 }
 0x229   : > { %vm1005_vm8 = vmand %vm1825_vm5, %vm1001_vm6  ;;  %vm985_vm10 = vcmp.ge.s32.totalorder %v973_v61, 1  ;;  %vm993_vm14 = vcmp.le.s32.totalorder %v973_v61, 32  ;;  %vm1002_vm15 = vcmp.le.s32.totalorder %v973_v61, 31  ;;  %vm1014_vm3 = vcmp.eq.s32.totalorder %v973_v61, 32 }
 0x22a   : > { %v784_v53 = vpack.c.b16 %v782_v51, %v781_v48  ;;  %v796_v54 = vpack.c.b16 %v794_v52, %v793_v41  ;;  %vm1009_vm11 = vmor %vm996_vm7, %vm1005_vm8  ;;  %vm986_vm7 = vcmp.ge.s32.totalorder %v974_v6, 1 }
 0x22b   : > { %vm1017_vm12 = vmand %vm1825_vm5, %vm1013_vm9  ;;  %v1022_v49 = vsel %vm1009_vm11, %v1021_v0, 0.0  ;;  %vm994_vm9 = vcmp.le.s32.totalorder %v974_v6, 32 }
 0x22c   : > { %940 = vmatmul.bf16.vlgmr.msrb.gmra.mxu2 %v784_v53  ;;  %959 = vmatmul.bf16.vlgmr.msrb.gmra.mxu3 %v796_v54  ;;  %vm989_vm13 = vmand %vm978_vm0, %vm985_vm10  ;;  %v1027_v5 = vsel %vm1017_vm12, %v1026_v1, 0.0  ;;  %vm1003_vm10 = vcmp.le.s32.totalorder %v974_v6, 31 }
 0x22d   : > { %vm997_vm1 = vmand %vm989_vm13, %vm993_vm14  ;;  %v1031_v16 = vadd.f32 %v1027_v5, %v1022_v49  ;;  %vm1015_vm13 = vcmp.eq.s32.totalorder %v974_v6, 32  ;;  %vm987_vm14 = vcmp.ge.s32.totalorder %v975_v20, 1 }
 0x22e   : > { %vm1006_vm2 = vmand %vm1825_vm5, %vm1002_vm15 }
 0x22f   : > { %vm1010_vm4 = vmor %vm997_vm1, %vm1006_vm2 }
 0x230   : > { %vm1018_vm6 = vmand %vm1825_vm5, %vm1014_vm3  ;;  %v1023_v13 = vsel %vm1010_vm4, %v1021_v0, 0.0  ;;  %vm995_vm3 = vcmp.le.s32.totalorder %v975_v20, 32  ;;  %vm1004_vm4 = vcmp.le.s32.totalorder %v975_v20, 31 }
 0x231   : > { %v1028_v14 = vsel %vm1018_vm6, %v1026_v1, 0.0  ;;  %vm990_vm8 = vmand %vm978_vm0, %vm986_vm7 }
 0x232   : > { %v1032_v26 = vadd.f32 %v1028_v14, %v1023_v13  ;;  %vm998_vm11 = vmand %vm990_vm8, %vm994_vm9  ;;  %vm1016_vm8 = vcmp.eq.s32.totalorder %v975_v20, 32 }
 0x233   : > { %vm1007_vm12 = vmand %vm1825_vm5, %vm1003_vm10 }
 0x234   : > { %vm1011_vm15 = vmor %vm998_vm11, %vm1007_vm12 }
 0x235   : > { %vm1019_vm1 = vmand %vm1825_vm5, %vm1015_vm13  ;;  %v1024_v23 = vsel %vm1011_vm15, %v1021_v0, 0.0 }
 0x236   : > { %vm991_vm2 = vmand %vm978_vm0, %vm987_vm14  ;;  %v1029_v24 = vsel %vm1019_vm1, %v1026_v1, 0.0 }
 0x237   : > { %vm999_vm6 = vmand %vm991_vm2, %vm995_vm3  ;;  %v1033_v25 = vadd.f32 %v1029_v24, %v1024_v23 }
 0x238   : > { %vm1008_vm7 = vmand %vm1825_vm5, %vm1004_vm4 }
 0x239   : > { %vm1012_vm9 = vmor %vm999_vm6, %vm1008_vm7 }
 0x23a   : > { %vm1020_vm10 = vmand %vm1825_vm5, %vm1016_vm8  ;;  %v1025_v2 = vsel %vm1012_vm9, %v1021_v0, 0.0 }
 0x23b   : > { %v1030_v31 = vsel %vm1020_vm10, %v1026_v1, 0.0 }
 0x23c   : > { %v1034_v4 = vadd.f32 %v1030_v31, %v1025_v2 }
 0x299   : > { %v936_v7 = vpop.f32.mrf.mxu0  ;;  %v955_v8 = vpop.f32.mrf.mxu1 }
 0x29a   : > { %v956_v10 = vadd.f32 %v955_v8, %v936_v7 }
 0x29c   : > { %v1035_v12 = vmul.f32 %v1031_v16, %v956_v10 }
 0x29e   : > { %1039 = vst [vmem:[%s1843_s20] sm:$0xff] %v1035_v12 }
 0x2a1   : > { %v938_v15 = vpop.f32.mrf.mxu0  ;;  %v957_v18 = vpop.f32.mrf.mxu1 }
 0x2a2   : > { %v958_v21 = vadd.f32 %v957_v18, %v938_v15 }
 0x2a4   : > { %v1036_v22 = vmul.f32 %v1032_v26, %v958_v21 }
 0x2a6   : > { %1040 = vst [vmem:[%s1843_s20 + $0x8] sm:$0xff] %v1036_v22 }
 0x2af   : > { %v941_v28 = vpop.f32.mrf.mxu2  ;;  %v960_v29 = vpop.f32.mrf.mxu3 }
 0x2b0   : > { %v961_v39 = vadd.f32 %v960_v29, %v941_v28 }
 0x2b2   : > { %v1037_v30 = vmul.f32 %v1033_v25, %v961_v39 }
 0x2b4   : > { %1041 = vst [vmem:[%s1843_s20 + $0x10] sm:$0xff] %v1037_v30 }
 0x2b7   : > { %v943_v33 = vpop.f32.mrf.mxu2  ;;  %v962_v34 = vpop.f32.mrf.mxu3 }
 0x2b8   : > { %v963_v35 = vadd.f32 %v962_v34, %v943_v33 }
 0x2ba   : > { %v1038_v36 = vmul.f32 %v1034_v4, %v963_v35 }
 0x2bc   : > { %1042 = vst [vmem:[%s1843_s20 + $0x18] sm:$0xff] %v1038_v36 }
 0x2bd PF: > { %s20_s30 = sadd.s32 1, %s1469_s30  }
 0x2be   : > { %p17_p7 = scmp.ge.s32.totalorder %s20_s30, 4  }
 0x2c0   :  { %19 = sbr.rel (!%p17_p7) target bundleno = 1 (0x1), region = 91 }
 0x2c5   :  { %1065 = vsyncpa [#allocation3], 1 }
 0x2c6   :  { %1067 = vsyncpa [#allocation3 + $0x1], 1 }

</bundles_post_ra>
